<compile_context>
chip_gen: v7x
topology: tpu7x:2x2x1
jax: 0.10.0
libtpu: 0.0.40
codegen_flags: <defaults>
</compile_context>

<pallas_src>
import functools

import jax
import jax.numpy as jnp
from jax.experimental import pallas as pl
from jax.experimental.pallas import tpu as pltpu


def _kd_loss_kernel(inv_t_ref, s_ref, t_ref, o_ref, *,
                    total_rows: int, block_rows: int, mask_rows: bool):
    """Partial (un-normalized) KL sum for one (block_rows, C) batch tile.

    inv_t_ref: (1,) f32 scalar-prefetch (SMEM) holding 1/T.
    s_ref, t_ref: (block_rows, C) student / teacher logit tiles in VMEM.
    o_ref: (1, 8, 128) f32 output tile; the tile's partial KL sum is written
           at [0, 0, 0] and zeros elsewhere (aligned, unmasked store).
    """
    inv_t = inv_t_ref[0].astype(jnp.float32)
    s = s_ref[...].astype(jnp.float32) * inv_t
    t = t_ref[...].astype(jnp.float32) * inv_t

    # Student log-softmax pieces (row-wise, dim=1).
    s_max = jnp.max(s, axis=1, keepdims=True)
    s_shift = s - s_max
    s_sum = jnp.sum(jnp.exp(s_shift), axis=1, keepdims=True)

    # Teacher softmax pieces (row-wise).
    t_max = jnp.max(t, axis=1, keepdims=True)
    t_shift = t - t_max
    t_exp = jnp.exp(t_shift)
    t_sum = jnp.sum(t_exp, axis=1, keepdims=True)

    # log p_t - log p_s == (t_shift - s_shift) + (log s_sum - log t_sum);
    # neither p_t nor log_p_t is materialized, and the single per-row divide
    # happens after the lane reduction via the EUP approximate reciprocal.
    log_ratio = (t_shift - s_shift) + (jnp.log(s_sum) - jnp.log(t_sum))
    inner = jnp.sum(t_exp * log_ratio, axis=1, keepdims=True)       # (TB, 1)
    row_kl = inner * pl.reciprocal(t_sum, approx=True)              # (TB, 1)

    if mask_rows:
        # Zero out padded rows of a ragged final tile (they may hold garbage;
        # row-wise reductions keep that garbage confined to those rows).
        row0 = pl.program_id(0) * block_rows
        rid = row0 + jax.lax.broadcasted_iota(jnp.int32, row_kl.shape, 0)
        row_kl = jnp.where(rid < total_rows, row_kl, 0.0)

    total = jnp.sum(row_kl)

    # (8, 128)-aligned output tile: partial sum at [0, 0], zeros elsewhere.
    r = jax.lax.broadcasted_iota(jnp.int32, (8, 128), 0)
    c = jax.lax.broadcasted_iota(jnp.int32, (8, 128), 1)
    o_ref[...] = jnp.where((r == 0) & (c == 0), total, 0.0)[None]


def _choose_block_rows(batch: int, num_classes: int, itemsize: int) -> int:
    """Largest batch tile such that 2 inputs x 2 pipeline buffers fit ~24 MiB
    (leaves headroom under the 32 MiB scoped-VMEM default on all generations,
    including v7x's 64 MiB physical VMEM)."""
    budget = 24 * 1024 * 1024
    rows = budget // (4 * num_classes * itemsize)
    rows = int(max(8, min(rows, 1024)))
    if rows >= batch:
        return batch
    return max(8, (rows // 8) * 8)


def kd_loss(out_s: jax.Array, out_t: jax.Array, T: float,
            block_rows: int | None = None) -> jax.Array:
    """Pallas-backed KDLoss.forward(out_s, out_t)."""
    assert out_s.shape == out_t.shape and out_s.ndim == 2
    B, C = out_s.shape
    itemsize = jnp.dtype(out_s.dtype).itemsize

    if block_rows is None:
        block_rows = _choose_block_rows(B, C, itemsize)
    else:
        block_rows = min(block_rows, B)
        if block_rows < B:
            block_rows = max(8, (block_rows // 8) * 8)

    grid = pl.cdiv(B, block_rows)
    mask_rows = (B % block_rows) != 0

    kernel = functools.partial(
        _kd_loss_kernel,
        total_rows=B, block_rows=block_rows, mask_rows=mask_rows)

    # 1/T as a prefetched SMEM scalar: no recompile per temperature value,
    # and the full-tile divides become multiplies.
    inv_t = jnp.full((1,), 1.0 / float(T), dtype=jnp.float32)

    # Explicit scoped-VMEM limit: double-buffered inputs + small slack.
    vmem_limit = int(min(
        48 * 1024 * 1024,
        max(16 * 1024 * 1024,
            4 * block_rows * C * itemsize + 2 * 1024 * 1024)))

    partial = pl.pallas_call(
        kernel,
        out_shape=jax.ShapeDtypeStruct((grid, 8, 128), jnp.float32),
        grid_spec=pltpu.PrefetchScalarGridSpec(
            num_scalar_prefetch=1,
            grid=(grid,),
            in_specs=[
                pl.BlockSpec((block_rows, C), lambda i, inv_t: (i, 0)),
                pl.BlockSpec((block_rows, C), lambda i, inv_t: (i, 0)),
            ],
            out_specs=pl.BlockSpec((1, 8, 128), lambda i, inv_t: (i, 0, 0)),
        ),
        compiler_params=pltpu.CompilerParams(
            dimension_semantics=("parallel",),
            vmem_limit_bytes=vmem_limit,
        ),
    )(inv_t, out_s, out_t)

    # batchmean over the FULL batch B, then * T^2.
    return jnp.sum(partial) * (float(T) * float(T) / B)


def _kd_loss_ref(out_s, out_t, T):
    """Pure-JAX reference for validation."""
    s = out_s.astype(jnp.float32) / T
    t = out_t.astype(jnp.float32) / T
    log_p_s = jax.nn.log_softmax(s, axis=1)
    p_t = jax.nn.softmax(t, axis=1)
    log_p_t = jax.nn.log_softmax(t, axis=1)
    return jnp.sum(p_t * (log_p_t - log_p_s)) / out_s.shape[0] * T * T


if __name__ == "__main__":
    key = jax.random.PRNGKey(0)
    k1, k2, k3, k4 = jax.random.split(key, 4)

    # Case 1: typical classifier logits, single batch tile.
    B1, C1, T1 = 8, 128, 4.0
    s1 = jax.random.normal(k1, (B1, C1), dtype=jnp.float32)
    t1 = jax.random.normal(k2, (B1, C1), dtype=jnp.float32)
    loss1 = kd_loss(s1, t1, T1)
    jax.block_until_ready(loss1)
    ref1 = _kd_loss_ref(s1, t1, T1)
    assert jnp.allclose(loss1, ref1, rtol=1e-3, atol=1e-5), (loss1, ref1)

    # Case 2: forces multi-tile grid (grid=3) with a ragged, masked final tile.
    B2, C2, T2 = 20, 256, 3.0
    s2 = jax.random.normal(k3, (B2, C2), dtype=jnp.float32)
    t2 = jax.random.normal(k4, (B2, C2), dtype=jnp.float32)
    loss2 = kd_loss(s2, t2, T2, block_rows=8)
    jax.block_until_ready(loss2)
    ref2 = _kd_loss_ref(s2, t2, T2)
    assert jnp.allclose(loss2, ref2, rtol=1e-3, atol=1e-5), (loss2, ref2)

    print("KERNEL_OK")
</pallas_src>

<mosaic_0001>
module attributes {stable_mosaic.version = 11 : i64} {
  func.func @_kd_loss_kernel(%arg0: i32, %arg1: memref<1xf32, #tpu.memory_space<smem>>, %arg2: memref<8x128xf32, #tpu.memory_space<vmem>>, %arg3: memref<8x128xf32, #tpu.memory_space<vmem>>, %arg4: memref<1x8x128xf32, #tpu.memory_space<vmem>>) attributes {dimension_semantics = [#tpu.dimension_semantics<parallel>], iteration_bounds = array<i64: 1>, scalar_prefetch = 1 : i64, scratch_operands = 0 : i64, tpu.core_type = #tpu.core_type<tc>, window_params = [{transform_indices = @transform_0, window_bounds = array<i64: 8, 128>}, {transform_indices = @transform_1, window_bounds = array<i64: 8, 128>}, {transform_indices = @transform_2, window_bounds = array<i64: 1, 8, 128>}]} {
    %c0 = arith.constant 0 : index
    %0 = memref.load %arg1[%c0] : memref<1xf32, #tpu.memory_space<smem>>
    %c0_0 = arith.constant 0 : index
    %c0_1 = arith.constant 0 : index
    %1 = vector.load %arg2[%c0_0, %c0_1] : memref<8x128xf32, #tpu.memory_space<vmem>>, vector<8x128xf32>
    %2 = vector.broadcast %0 : f32 to vector<8x128xf32>
    %3 = arith.mulf %1, %2 : vector<8x128xf32>
    %c0_2 = arith.constant 0 : index
    %c0_3 = arith.constant 0 : index
    %4 = vector.load %arg3[%c0_2, %c0_3] : memref<8x128xf32, #tpu.memory_space<vmem>>, vector<8x128xf32>
    %5 = vector.broadcast %0 : f32 to vector<8x128xf32>
    %6 = arith.mulf %4, %5 : vector<8x128xf32>
    %cst = arith.constant dense<0xFF800000> : vector<8xf32>
    %7 = vector.multi_reduction <maximumf>, %3, %cst [1] : vector<8x128xf32> to vector<8xf32>
    %8 = vector.shape_cast %7 : vector<8xf32> to vector<8x1xf32>
    %9 = vector.broadcast %8 : vector<8x1xf32> to vector<8x128xf32>
    %10 = arith.subf %3, %9 : vector<8x128xf32>
    %11 = math.exp %10 : vector<8x128xf32>
    %cst_4 = arith.constant dense<0.000000e+00> : vector<8xf32>
    %12 = vector.multi_reduction <add>, %11, %cst_4 [1] : vector<8x128xf32> to vector<8xf32>
    %13 = vector.shape_cast %12 : vector<8xf32> to vector<8x1xf32>
    %cst_5 = arith.constant dense<0xFF800000> : vector<8xf32>
    %14 = vector.multi_reduction <maximumf>, %6, %cst_5 [1] : vector<8x128xf32> to vector<8xf32>
    %15 = vector.shape_cast %14 : vector<8xf32> to vector<8x1xf32>
    %16 = vector.broadcast %15 : vector<8x1xf32> to vector<8x128xf32>
    %17 = arith.subf %6, %16 : vector<8x128xf32>
    %18 = math.exp %17 : vector<8x128xf32>
    %cst_6 = arith.constant dense<0.000000e+00> : vector<8xf32>
    %19 = vector.multi_reduction <add>, %18, %cst_6 [1] : vector<8x128xf32> to vector<8xf32>
    %20 = vector.shape_cast %19 : vector<8xf32> to vector<8x1xf32>
    %21 = arith.subf %17, %10 : vector<8x128xf32>
    %22 = math.log %13 : vector<8x1xf32>
    %23 = math.log %20 : vector<8x1xf32>
    %24 = arith.subf %22, %23 : vector<8x1xf32>
    %25 = vector.broadcast %24 : vector<8x1xf32> to vector<8x128xf32>
    %26 = arith.addf %21, %25 : vector<8x128xf32>
    %27 = arith.mulf %18, %26 : vector<8x128xf32>
    %cst_7 = arith.constant dense<0.000000e+00> : vector<8xf32>
    %28 = vector.multi_reduction <add>, %27, %cst_7 [1] : vector<8x128xf32> to vector<8xf32>
    %29 = vector.shape_cast %28 : vector<8xf32> to vector<8x1xf32>
    %30 = tpu.reciprocal %20 {approx = true} : vector<8x1xf32> -> vector<8x1xf32>
    %31 = arith.mulf %29, %30 : vector<8x1xf32>
    %32 = vector.shape_cast %31 : vector<8x1xf32> to vector<1x8x1xf32>
    %cst_8 = arith.constant dense<0.000000e+00> : vector<1xf32>
    %33 = vector.multi_reduction <add>, %32, %cst_8 [1, 2] : vector<1x8x1xf32> to vector<1xf32>
    %34 = vector.shape_cast %33 : vector<1xf32> to vector<1x1x1xf32>
    %35 = vector.extract %34[0, 0, 0] : f32 from vector<1x1x1xf32>
    %36 = tpu.iota {dimensions = array<i32: 0>} : vector<8x128xi32>
    %37 = tpu.iota {dimensions = array<i32: 1>} : vector<8x128xi32>
    %c0_i32 = arith.constant 0 : i32
    %38 = vector.broadcast %c0_i32 : i32 to vector<8x128xi32>
    %39 = arith.cmpi eq, %36, %38 : vector<8x128xi32>
    %c0_i32_9 = arith.constant 0 : i32
    %40 = vector.broadcast %c0_i32_9 : i32 to vector<8x128xi32>
    %41 = arith.cmpi eq, %37, %40 : vector<8x128xi32>
    %42 = arith.andi %39, %41 : vector<8x128xi1>
    %cst_10 = arith.constant 0.000000e+00 : f32
    %43 = vector.broadcast %35 : f32 to vector<8x128xf32>
    %44 = vector.broadcast %cst_10 : f32 to vector<8x128xf32>
    %45 = arith.select %42, %43, %44 : vector<8x128xi1>, vector<8x128xf32>
    %46 = vector.shape_cast %45 : vector<8x128xf32> to vector<1x8x128xf32>
    %c0_11 = arith.constant 0 : index
    %c0_12 = arith.constant 0 : index
    %c0_13 = arith.constant 0 : index
    %47 = vector.load %arg4[%c0_11, %c0_12, %c0_13] : memref<1x8x128xf32, #tpu.memory_space<vmem>>, vector<1x8x128xf32>
    tpu.vector_store %arg4[%c0_11, %c0_12, %c0_13], %46 {strides = array<i32>} : memref<1x8x128xf32, #tpu.memory_space<vmem>>, vector<1x8x128xf32>,
    return
  }
  func.func @transform_0(%arg0: i32, %arg1: memref<1xf32, #tpu.memory_space<smem>>) -> (i32, i32) {
    %c0_i32 = arith.constant 0 : i32
    %c0_i32_0 = arith.constant 0 : i32
    return %arg0, %c0_i32 : i32, i32
  }
  func.func @transform_1(%arg0: i32, %arg1: memref<1xf32, #tpu.memory_space<smem>>) -> (i32, i32) {
    %c0_i32 = arith.constant 0 : i32
    %c0_i32_0 = arith.constant 0 : i32
    return %arg0, %c0_i32 : i32, i32
  }
  func.func @transform_2(%arg0: i32, %arg1: memref<1xf32, #tpu.memory_space<smem>>) -> (i32, i32, i32) {
    %c0_i32 = arith.constant 0 : i32
    %c0_i32_0 = arith.constant 0 : i32
    %c0_i32_1 = arith.constant 0 : i32
    return %arg0, %c0_i32, %c0_i32_0 : i32, i32, i32
  }
}

</mosaic_0001>

<bundles_post_ra>
// kernel: tpu_custom_call.1
= control target key start
LH: loop header
LB: loop body
LE: loop exit
PB: predicated region body
PF: predicated region fallthrough
CT: control target
= control target key end

     0   :  { %9 = vsyncpa [#allocation5], 0  ;;  %s256_s0 = inlined_call_operand.<no memory space> [shape: f32[1], index: 0, kind: input, shape index: {}]   ;;  %s257_s1 = inlined_call_operand.hbm [shape: f32[8,128], index: 1, kind: input, shape index: {}]   ;;  %s258_s2 = inlined_call_operand.hbm [shape: f32[8,128], index: 2, kind: input, shape index: {}]   ;;  %s259_s3 = inlined_call_operand.hbm [shape: f32[1,8,128], index: 3, kind: output, shape index: {}]  }
   0x1   :  { %10 = vsyncpa [#allocation8], 0 }
   0x2   :  { %11 = vsyncpa [#allocation6], 0  ;;  %s194_s12 = smov [#allocation4]   ;;  %s195_s14 = smov [#allocation7]  }
   0x3   :  { %s18_s13 = sshll.u32 %s194_s12, 4  ;;  %s28_s15 = sshll.u32 %s195_s14, 4  ;;  %s19_s13 = int_to_ptr.vmem [resolvable:$true] %s18_s13  ;;  %s29_s15 = int_to_ptr.vmem [resolvable:$true] %s28_s15 }
   0x4   :  { %s122_s18 = scalar_lea.hbm %s257_s1, 128 }
   0x5   :  { %p123_p0 = scmp.ne.s32.totalorder %s257_s1, %s122_s18  ;;  %p126_p1 = scmp.lt.u32.totalorder %s122_s18, %s257_s1 }
   0x7   :  { %p128_p2 = pnand %p126_p1, %p123_p0 }
   0x9   :  { %131 = shalt.err (!%p128_p2)
}
   0xa   :  { %s132_s23 = scalar_lea.vmem %s19_s13, 128  ;;  %p137_p4 = scmp.lt.s32.totalorder %s19_s13, %s19_s13 }
   0xb   :  { %p133_p3 = scmp.ne.s32.totalorder %s19_s13, %s132_s23  ;;  %p138_p5 = scmp.lt.s32.totalorder %s132_s23, %s132_s23 }
   0xd   :  { %p139_p6 = por %p138_p5, %p137_p4 }
   0xf   :  { %p140_p7 = pnand %p139_p6, %p133_p3 }
  0x11   :  { %143 = shalt.err (!%p140_p7)
}
  0x12   :  { %21 = dma.hbm_to_vmem [thread:$0]  %s257_s1, 128, %s19_s13, [#allocation5]  }
  0x13   :  { %s144_s28 = scalar_lea.hbm %s258_s2, 128 }
  0x14   :  { %p145_p8 = scmp.ne.s32.totalorder %s258_s2, %s144_s28  ;;  %p148_p9 = scmp.lt.u32.totalorder %s144_s28, %s258_s2 }
  0x16   :  { %p150_p10 = pnand %p148_p9, %p145_p8 }
  0x18   :  { %153 = shalt.err (!%p150_p10)
}
  0x19   :  { %s154_s6 = scalar_lea.vmem %s29_s15, 128  ;;  %p159_p12 = scmp.lt.s32.totalorder %s29_s15, %s29_s15 }
  0x1a   :  { %p155_p11 = scmp.ne.s32.totalorder %s29_s15, %s154_s6  ;;  %p160_p13 = scmp.lt.s32.totalorder %s154_s6, %s154_s6 }
  0x1c   :  { %p161_p0 = por %p160_p13, %p159_p12 }
  0x1e   :  { %p162_p1 = pnand %p161_p0, %p155_p11 }
  0x20   :  { %165 = shalt.err (!%p162_p1)
}
  0x21   :  { %31 = dma.hbm_to_vmem [thread:$0]  %s258_s2, 128, %s29_s15, [#allocation8]  }
  0x22   :  { %188 = dma.done.wait [#allocation5], 128  }
  0x23   :  { %189 = vsyncadd [#allocation5], 4294967168 }
  0x24   :  { %190 = dma.done.wait [#allocation8], 128  }
  0x25   :  { %191 = vsyncadd [#allocation8], 4294967168  ;;  %v40_v0 = vstv %s256_s0  ;;  %v39_v1 = vld [vmem:[#allocation4] sm:$0xff]  ;;  %v42_v2 = vld [vmem:[#allocation7] sm:$0xff]  ;;  %vm70_vm0 = vcmask 7168   ;;  %v81_v34 = vlaneseq  ;;  %s196_s0 = smov [#allocation9]  }
  0x26   :  { %v41_v3 = vmul.f32 %v40_v0, %v39_v1  ;;  %v43_v4 = vmul.f32 %v42_v2, %v40_v0  ;;  %s97_s2 = sshll.u32 %s196_s0, 4  ;;  %s98_s2 = int_to_ptr.vmem [resolvable:$true] %s97_s2 }
  0x27   :  { %v82_v35 = vshrl.u32 %v81_v34, 7  ;;  %v84_v36 = vand.u32 127, %v81_v34  ;;  %s166_s11 = scalar_lea.vmem %s98_s2, 128  ;;  %p171_p3 = scmp.lt.s32.totalorder %s98_s2, %s98_s2 }
  0x28   :  { %44 = vmax.xlane.f32.xlu0 %v41_v3  ;;  %p167_p2 = scmp.ne.s32.totalorder %s98_s2, %s166_s11  ;;  %p172_p4 = scmp.lt.s32.totalorder %s166_s11, %s166_s11 }
  0x29   :  { %vm85_vm1 = vcmp.eq.s32.totalorder %v82_v35, 0  ;;  %vm86_vm2 = vcmp.eq.s32.totalorder %v84_v36, 0 }
  0x2a   :  { %vm87_vm3 = vmand %vm85_vm1, %vm86_vm2  ;;  %p173_p5 = por %p172_p4, %p171_p3 }
  0x2c   :  { %51 = vmax.xlane.f32.xlu0 %v43_v4  ;;  %p174_p6 = pnand %p173_p5, %p167_p2 }
  0xb5   :  { %v45_v5 = vpop.xlane.xlu0 %44 }
  0xb6   :  { %v46_v6 = vsub.f32 %v41_v3, %v45_v5 }
  0xb8   :  { %v47_v7 = vmul.f32 1.442695, %v46_v6 }
  0xb9   :  { %v52_v8 = vpop.xlane.xlu0 %51 }
  0xba   :  { %v53_v9 = vsub.f32 %v43_v4, %v52_v8  ;;  %112 = vpow2.f32 %v47_v7 }
  0xbc   :  { %v54_v10 = vmul.f32 1.442695, %v53_v9  ;;  %v58_v11 = vsub.f32 %v53_v9, %v46_v6 }
  0xbe   :  { %114 = vpow2.f32 %v54_v10 }
  0xc4   :  { %v113_v12 = vpop.eup %112 }
  0xc5   :  { %49 = vadd.xlane.f32.xlu1 %v113_v12 }
  0xc8   :  { %v115_v13 = vpop.eup %114 }
  0xc9   :  { %56 = vadd.xlane.f32.xlu1 %v115_v13 }
 0x152   :  { %v50_v14 = vpop.xlane.xlu1 %49 }
 0x153   :  { %116 = vlog2.f32 %v50_v14 }
 0x156   :  { %v57_v15 = vpop.xlane.xlu1 %56 }
 0x157   :  { %118 = vlog2.f32 %v57_v15 }
 0x158   :  { %120 = vrcp.f32 %v57_v15 }
 0x15d   :  { %v117_v16 = vpop.eup %116 }
 0x15e   :  { %v60_v18 = vmul.f32 0.6931472, %v117_v16 }
 0x161   :  { %v119_v17 = vpop.eup %118 }
 0x162   :  { %v62_v19 = vmul.f32 0.6931472, %v119_v17  ;;  %v121_v23 = vpop.eup %120 }
 0x164   :  { %v63_v20 = vsub.f32 %v60_v18, %v62_v19 }
 0x166   :  { %v64_v21 = vadd.f32 %v63_v20, %v58_v11 }
 0x168   :  { %v65_v22 = vmul.f32 %v115_v13, %v64_v21 }
 0x16a   :  { %66 = vadd.xlane.f32.xlu0 %v65_v22 }
 0x1f7   :  { %v67_v24 = vpop.xlane.xlu0 %66 }
 0x1f8   :  { %v69_v25 = vmul.f32 %v121_v23, %v67_v24 }
 0x1fa   :  { %v71_v26 = vsel %vm70_vm0, %v69_v25, 0.0 }
 0x1fb   :  { %72 = vadd.xlane.f32.xlu1 %v71_v26 }
 0x288   :  { %v73_v27 = vpop.xlane.xlu1 %72 }
 0x289   :  { %v74_v28 = vrot.slane %v73_v27, 4 }
 0x28b   :  { %v75_v29 = vadd.f32 %v74_v28, %v73_v27 }
 0x28d   :  { %v76_v30 = vrot.slane %v75_v29, 2 }
 0x28f   :  { %v77_v31 = vadd.f32 %v76_v30, %v75_v29 }
 0x291   :  { %v78_v32 = vrot.slane %v77_v31, 1 }
 0x293   :  { %v79_v33 = vadd.f32 %v78_v32, %v77_v31 }
 0x295   :  { %107 = vpush %v79_v33 }
 0x2c6   :  { %s108_s10 = spop %107 }
 0x2c7   :  { %v88_v37 = vstv %s108_s10 }
 0x2c8   :  { %v89_v38 = vsel %vm87_vm3, %v88_v37, 0.0 }
 0x2c9   :  { %90 = vst [vmem:[#allocation9] sm:$0xff] %v89_v38 }
 0x2ca   :  { %177 = shalt.err (!%p174_p6)
}
 0x2cb   :  { %s178_s14 = scalar_lea.hbm %s259_s3, 128 }
 0x2cc   :  { %p179_p7 = scmp.ne.s32.totalorder %s259_s3, %s178_s14  ;;  %p182_p8 = scmp.lt.u32.totalorder %s178_s14, %s259_s3 }
 0x2ce   :  { %p184_p9 = pnand %p182_p8, %p179_p7 }
 0x2d0   :  { %187 = shalt.err (!%p184_p9)
}
 0x2d1   :  { %100 = dma.vmem_to_hbm [thread:$0]  %s98_s2, 128, %s259_s3, [#allocation6]  }
 0x2d2   :  { %192 = dma.done.wait [#allocation6], 128  }
 0x2d3   :  { %193 = vsyncadd [#allocation6], 4294967168 }
 0x2d4   :  { %104 = vsyncpa [#allocation5], 1 }
 0x2d5   :  { %105 = vsyncpa [#allocation8], 1 }
 0x2d6   :  { %106 = vsyncpa [#allocation6], 1 }

</bundles_post_ra>
